<compile_context>
chip_gen: v7x
topology: tpu7x:2x2x1
jax: 0.10.0
libtpu: 0.0.40
codegen_flags: <defaults>
</compile_context>

<pallas_src>
import jax
import jax.numpy as jnp
from jax.experimental import pallas as pl
from jax.experimental.pallas import tpu as pltpu


N_PAD = 128          # padded hidden / class width (one full lane tile)
IN_FEATURES = 4
HIDDEN = 100
N_CLASSES = 3
NEG_BIG = -1e30      # drives exp() of padded logit lanes to 0
TB_CAP = 2048        # max batch-tile rows (~1 MB of bf16 activations per buffer)


def _round_up(x, m):
    return -(-x // m) * m


def _choose_tile(batch):
    """Pick the batch tile TB (multiple of 16) and padded batch Bp (multiple of TB).

    Aims for >= 2 grid steps so both v7x TensorCores get work, capped at
    TB_CAP rows so per-step VMEM stays tiny on every generation."""
    bp = _round_up(max(batch, 1), 16)
    half = _round_up(-(-bp // 2), 16)         # ceil(bp/2) rounded to 16
    tb = max(16, min(TB_CAP, half))
    bp = _round_up(bp, tb)
    return tb, bp


def _mlp_kernel(x_ref, w_ref, b_ref, o_ref):
    # x_ref: [TB, 4]   bf16
    # w_ref: [128, 384] bf16 packed (w1 rows 0:4 | w2 | w3), zero padded
    # b_ref: [1, 384]   f32 packed (b1 | b2 | b3), fc3 pad lanes = -1e30
    # o_ref: [TB, 128]  bf16 (softmax; cols 3:128 are 0)
    x = x_ref[...]

    w1 = w_ref[0:IN_FEATURES, 0:N_PAD]        # [4, 128]
    w2 = w_ref[:, N_PAD:2 * N_PAD]            # [128, 128]
    w3 = w_ref[:, 2 * N_PAD:3 * N_PAD]        # [128, 128]
    b1 = b_ref[:, 0:N_PAD]
    b2 = b_ref[:, N_PAD:2 * N_PAD]
    b3 = b_ref[:, 2 * N_PAD:3 * N_PAD]

    # fc1 + ReLU (f32 accumulate; K=4 contraction — Mosaic zero-pads internally)
    h1 = jnp.dot(x, w1, preferred_element_type=jnp.float32) + b1
    h1 = jnp.maximum(h1, 0.0)

    # fc2 (no activation, as in the PyTorch module)
    h2 = jnp.dot(h1.astype(jnp.bfloat16), w2,
                 preferred_element_type=jnp.float32) + b2

    # fc3 — padded logit lanes get -1e30 from the bias slab
    h3 = jnp.dot(h2.astype(jnp.bfloat16), w3,
                 preferred_element_type=jnp.float32) + b3

    # numerically stable softmax over the padded 128 lanes (pad lanes -> 0)
    m = jnp.max(h3, axis=1, keepdims=True)
    e = jnp.exp(h3 - m)
    s = jnp.sum(e, axis=1, keepdims=True)
    o_ref[...] = (e * pl.reciprocal(s, approx=False)).astype(jnp.bfloat16)


def net_forward(x, params):
    """x: [B, 4] float32; params: {'w': [128, 384] bf16, 'b': [1, 384] f32}."""
    B = x.shape[0]
    W, b = params["w"], params["b"]

    TB, Bp = _choose_tile(B)

    # Only a tiny [B,4] cast + (optional) batch-row pad in the wrapper;
    # no lane padding of the input in HBM.
    x_bf = x.astype(jnp.bfloat16)
    if Bp != B:
        x_bf = jnp.pad(x_bf, ((0, Bp - B), (0, 0)))

    flops = 2 * Bp * (IN_FEATURES * N_PAD + N_PAD * N_PAD + N_PAD * N_PAD)
    bytes_accessed = (Bp * IN_FEATURES * 2        # x bf16
                      + N_PAD * 3 * N_PAD * 2     # packed weights bf16
                      + 3 * N_PAD * 4             # packed biases f32
                      + Bp * N_PAD * 2)           # output bf16

    out = pl.pallas_call(
        _mlp_kernel,
        out_shape=jax.ShapeDtypeStruct((Bp, N_PAD), jnp.bfloat16),
        grid=(Bp // TB,),
        in_specs=[
            pl.BlockSpec((TB, IN_FEATURES), lambda i: (i, 0)),       # activations
            pl.BlockSpec((N_PAD, 3 * N_PAD), lambda i: (0, 0)),      # packed weights
            pl.BlockSpec((1, 3 * N_PAD), lambda i: (0, 0)),          # packed biases
        ],
        out_specs=pl.BlockSpec((TB, N_PAD), lambda i: (i, 0)),
        compiler_params=pltpu.CompilerParams(
            dimension_semantics=("parallel",)),
        cost_estimate=pl.CostEstimate(
            flops=flops,
            transcendentals=Bp * N_PAD,
            bytes_accessed=bytes_accessed),
    )(x_bf, W, b)

    # Slice the 3 real classes; cast to f32 to match the PyTorch module's output dtype.
    return out[:B, :N_CLASSES].astype(jnp.float32)


def pack_params(w1, b1, w2, b2, w3, b3):
    """Pack per-layer (in, out) weights and (out,) biases into the padded slabs.

    Weights are stored as [in_features, out_features] (transposed vs torch),
    so the kernel computes y = x @ W + b, matching y = x @ W_pt.T + b."""
    W = jnp.zeros((N_PAD, 3 * N_PAD), jnp.float32)
    W = W.at[:IN_FEATURES, 0:HIDDEN].set(w1)                       # fc1
    W = W.at[:HIDDEN, N_PAD:N_PAD + HIDDEN].set(w2)                # fc2
    W = W.at[:HIDDEN, 2 * N_PAD:2 * N_PAD + N_CLASSES].set(w3)     # fc3

    B_ = jnp.zeros((1, 3 * N_PAD), jnp.float32)
    B_ = B_.at[0, 0:HIDDEN].set(b1)
    B_ = B_.at[0, N_PAD:N_PAD + HIDDEN].set(b2)
    # padded fc3 logit lanes -> -1e30 so softmax ignores them
    B_ = B_.at[0, 2 * N_PAD:3 * N_PAD].set(NEG_BIG)
    B_ = B_.at[0, 2 * N_PAD:2 * N_PAD + N_CLASSES].set(b3)

    return {"w": W.astype(jnp.bfloat16), "b": B_}


def init_params(key):
    """Deterministic init mimicking PyTorch Linear default U(-1/sqrt(in), 1/sqrt(in))."""
    def linear(key, fan_in, fan_out):
        kw, kb = jax.random.split(key)
        bound = 1.0 / jnp.sqrt(fan_in)
        w = jax.random.uniform(kw, (fan_in, fan_out), jnp.float32, -bound, bound)
        b = jax.random.uniform(kb, (fan_out,), jnp.float32, -bound, bound)
        return w, b

    k1, k2, k3 = jax.random.split(key, 3)
    w1, b1 = linear(k1, IN_FEATURES, HIDDEN)
    w2, b2 = linear(k2, HIDDEN, HIDDEN)
    w3, b3 = linear(k3, HIDDEN, N_CLASSES)
    return pack_params(w1, b1, w2, b2, w3, b3)


def net_forward_ref(x, params):
    """Pure-JAX f32 reference using the same packed (bf16-rounded) params."""
    W = params["w"].astype(jnp.float32)
    b = params["b"]
    h1 = jnp.maximum(x @ W[:IN_FEATURES, 0:N_PAD] + b[:, 0:N_PAD], 0.0)
    h2 = h1 @ W[:, N_PAD:2 * N_PAD] + b[:, N_PAD:2 * N_PAD]
    h3 = h2 @ W[:, 2 * N_PAD:3 * N_PAD] + b[:, 2 * N_PAD:3 * N_PAD]
    return jax.nn.softmax(h3, axis=1)[:, :N_CLASSES]


if __name__ == "__main__":
    key = jax.random.PRNGKey(0)
    k_params, k_x = jax.random.split(key)

    params = init_params(k_params)
    x = jax.random.normal(k_x, (8, IN_FEATURES), dtype=jnp.float32)  # batch=8

    fwd = jax.jit(net_forward)
    out = fwd(x, params)
    out = jax.block_until_ready(out)

    # sanity: shape, softmax rows ~1 (bf16 output rounding -> loose tol),
    # and agreement with a pure-JAX f32 reference on the same packed params
    # (bf16 weights/activations -> ~1e-2 deviation accepted).
    assert out.shape == (8, N_CLASSES)
    assert jnp.allclose(jnp.sum(out, axis=1), 1.0, atol=1e-2)
    ref = net_forward_ref(x, params)
    assert jnp.allclose(out, ref, atol=2e-2), (out, ref)

    print("KERNEL_OK")
</pallas_src>

<mosaic_0001>
module attributes {stable_mosaic.version = 11 : i64} {
  func.func @_mlp_kernel(%arg0: i32, %arg1: memref<16x4xbf16, #tpu.memory_space<vmem>>, %arg2: memref<128x384xbf16, #tpu.memory_space<vmem>>, %arg3: memref<1x384xf32, #tpu.memory_space<vmem>>, %arg4: memref<16x128xbf16, #tpu.memory_space<vmem>>) attributes {dimension_semantics = [#tpu.dimension_semantics<parallel>], iteration_bounds = array<i64: 1>, scalar_prefetch = 0 : i64, scratch_operands = 0 : i64, tpu.core_type = #tpu.core_type<tc>, window_params = [{transform_indices = @transform_0, window_bounds = array<i64: 16, 4>}, {pipeline_mode = #tpu.pipeline_mode<synchronous>, transform_indices = @transform_1, window_bounds = array<i64: 128, 384>}, {pipeline_mode = #tpu.pipeline_mode<synchronous>, transform_indices = @transform_2, window_bounds = array<i64: 1, 384>}, {transform_indices = @transform_3, window_bounds = array<i64: 16, 128>}]} {
    %c0 = arith.constant 0 : index
    %c0_0 = arith.constant 0 : index
    %0 = vector.load %arg1[%c0, %c0_0] : memref<16x4xbf16, #tpu.memory_space<vmem>>, vector<16x4xbf16>
    %c0_1 = arith.constant 0 : index
    %c0_2 = arith.constant 0 : index
    %1 = vector.load %arg2[%c0_1, %c0_2] : memref<128x384xbf16, #tpu.memory_space<vmem>>, vector<4x128xbf16>
    %c0_3 = arith.constant 0 : index
    %c128 = arith.constant 128 : index
    %2 = vector.load %arg2[%c0_3, %c128] : memref<128x384xbf16, #tpu.memory_space<vmem>>, vector<128x128xbf16>
    %c0_4 = arith.constant 0 : index
    %c256 = arith.constant 256 : index
    %3 = vector.load %arg2[%c0_4, %c256] : memref<128x384xbf16, #tpu.memory_space<vmem>>, vector<128x128xbf16>
    %c0_5 = arith.constant 0 : index
    %c0_6 = arith.constant 0 : index
    %4 = vector.load %arg3[%c0_5, %c0_6] : memref<1x384xf32, #tpu.memory_space<vmem>>, vector<1x128xf32>
    %c0_7 = arith.constant 0 : index
    %c128_8 = arith.constant 128 : index
    %5 = vector.load %arg3[%c0_7, %c128_8] : memref<1x384xf32, #tpu.memory_space<vmem>>, vector<1x128xf32>
    %c0_9 = arith.constant 0 : index
    %c256_10 = arith.constant 256 : index
    %6 = vector.load %arg3[%c0_9, %c256_10] : memref<1x384xf32, #tpu.memory_space<vmem>>, vector<1x128xf32>
    %cst = arith.constant dense<0.000000e+00> : vector<16x128xf32>
    %7 = tpu.matmul %0, %1, %cst {dimension_numbers = #tpu.dot_dimension_numbers<[1], [0], [0], [1], [0, 0, 1, 1], [], []>} : vector<16x4xbf16>, vector<4x128xbf16>, vector<16x128xf32> -> vector<16x128xf32>
    %8 = vector.broadcast %4 : vector<1x128xf32> to vector<16x128xf32>
    %9 = arith.addf %7, %8 : vector<16x128xf32>
    %cst_11 = arith.constant 0.000000e+00 : f32
    %10 = vector.broadcast %cst_11 : f32 to vector<16x128xf32>
    %11 = arith.maximumf %9, %10 : vector<16x128xf32>
    %12 = arith.truncf %11 : vector<16x128xf32> to vector<16x128xbf16>
    %cst_12 = arith.constant dense<0.000000e+00> : vector<16x128xf32>
    %13 = tpu.matmul %12, %2, %cst_12 {dimension_numbers = #tpu.dot_dimension_numbers<[1], [0], [0], [1], [0, 0, 1, 1], [], []>} : vector<16x128xbf16>, vector<128x128xbf16>, vector<16x128xf32> -> vector<16x128xf32>
    %14 = vector.broadcast %5 : vector<1x128xf32> to vector<16x128xf32>
    %15 = arith.addf %13, %14 : vector<16x128xf32>
    %16 = arith.truncf %15 : vector<16x128xf32> to vector<16x128xbf16>
    %cst_13 = arith.constant dense<0.000000e+00> : vector<16x128xf32>
    %17 = tpu.matmul %16, %3, %cst_13 {dimension_numbers = #tpu.dot_dimension_numbers<[1], [0], [0], [1], [0, 0, 1, 1], [], []>} : vector<16x128xbf16>, vector<128x128xbf16>, vector<16x128xf32> -> vector<16x128xf32>
    %18 = vector.broadcast %6 : vector<1x128xf32> to vector<16x128xf32>
    %19 = arith.addf %17, %18 : vector<16x128xf32>
    %cst_14 = arith.constant dense<0xFF800000> : vector<16xf32>
    %20 = vector.multi_reduction <maximumf>, %19, %cst_14 [1] : vector<16x128xf32> to vector<16xf32>
    %21 = vector.shape_cast %20 : vector<16xf32> to vector<16x1xf32>
    %22 = vector.broadcast %21 : vector<16x1xf32> to vector<16x128xf32>
    %23 = arith.subf %19, %22 : vector<16x128xf32>
    %24 = math.exp %23 : vector<16x128xf32>
    %cst_15 = arith.constant dense<0.000000e+00> : vector<16xf32>
    %25 = vector.multi_reduction <add>, %24, %cst_15 [1] : vector<16x128xf32> to vector<16xf32>
    %26 = vector.shape_cast %25 : vector<16xf32> to vector<16x1xf32>
    %27 = tpu.reciprocal %26 : vector<16x1xf32> -> vector<16x1xf32>
    %28 = vector.broadcast %27 : vector<16x1xf32> to vector<16x128xf32>
    %29 = arith.mulf %24, %28 : vector<16x128xf32>
    %30 = arith.truncf %29 : vector<16x128xf32> to vector<16x128xbf16>
    %c0_16 = arith.constant 0 : index
    %c0_17 = arith.constant 0 : index
    %31 = vector.load %arg4[%c0_16, %c0_17] : memref<16x128xbf16, #tpu.memory_space<vmem>>, vector<16x128xbf16>
    tpu.vector_store %arg4[%c0_16, %c0_17], %30 {strides = array<i32>} : memref<16x128xbf16, #tpu.memory_space<vmem>>, vector<16x128xbf16>,
    return
  }
  func.func @transform_0(%arg0: i32) -> (i32, i32) {
    %c0_i32 = arith.constant 0 : i32
    %c0_i32_0 = arith.constant 0 : i32
    return %arg0, %c0_i32 : i32, i32
  }
  func.func @transform_1(%arg0: i32) -> (i32, i32) {
    %c0_i32 = arith.constant 0 : i32
    %c0_i32_0 = arith.constant 0 : i32
    %c0_i32_1 = arith.constant 0 : i32
    return %c0_i32, %c0_i32_0 : i32, i32
  }
  func.func @transform_2(%arg0: i32) -> (i32, i32) {
    %c0_i32 = arith.constant 0 : i32
    %c0_i32_0 = arith.constant 0 : i32
    %c0_i32_1 = arith.constant 0 : i32
    return %c0_i32, %c0_i32_0 : i32, i32
  }
  func.func @transform_3(%arg0: i32) -> (i32, i32) {
    %c0_i32 = arith.constant 0 : i32
    %c0_i32_0 = arith.constant 0 : i32
    return %arg0, %c0_i32 : i32, i32
  }
}

</mosaic_0001>

<bundles_post_ra>
// kernel: net_forward.1
= control target key start
LH: loop header
LB: loop body
LE: loop exit
PB: predicated region body
PF: predicated region fallthrough
CT: control target
= control target key end

     0   :  { %8 = vsyncpa [#allocation3], 0  ;;  %s504_s12 = smov [#allocation2]   ;;  %s579_s0 = inlined_call_operand.vmem [shape: bf16[16,4], index: 0, kind: input, shape index: {}]   ;;  %s580_s1 = inlined_call_operand.hbm [shape: bf16[128,384], index: 1, kind: input, shape index: {}]   ;;  %s581_s2 = inlined_call_operand.vmem [shape: f32[1,384], index: 2, kind: input, shape index: {}]   ;;  %s582_s3 = inlined_call_operand.vmem [shape: bf16[16,128], index: 3, kind: output, shape index: {}]  }
   0x1   :  { %s16_s13 = sshll.u32 %s504_s12, 4  ;;  %s480_s16 = scalar_lea.hbm %s580_s1, 3072  ;;  %s17_s13 = int_to_ptr.vmem [resolvable:$true] %s16_s13 }
   0x2   :  { %p481_p0 = scmp.ne.s32.totalorder %s580_s1, %s480_s16  ;;  %p484_p1 = scmp.lt.u32.totalorder %s480_s16, %s580_s1 }
   0x4   :  { %p486_p2 = pnand %p484_p1, %p481_p0 }
   0x6   :  { %489 = shalt.err (!%p486_p2)
}
   0x7   :  { %s490_s21 = scalar_lea.vmem %s17_s13, 3072  ;;  %p495_p4 = scmp.lt.s32.totalorder %s17_s13, %s17_s13 }
   0x8   :  { %p491_p3 = scmp.ne.s32.totalorder %s17_s13, %s490_s21  ;;  %p496_p5 = scmp.lt.s32.totalorder %s490_s21, %s490_s21 }
   0xa   :  { %p497_p6 = por %p496_p5, %p495_p4 }
   0xc   :  { %p498_p7 = pnand %p497_p6, %p491_p3 }
   0xe   :  { %501 = shalt.err (!%p498_p7)
}
   0xf   :  { %s505_s22 = smov 192   ;;  %s506_s23 = smov 12  }
  0x10   :  { %22 = dma.hbm_to_vmem [thread:$0]  %s580_s1, 3072, %s17_s13, [#allocation3], %s505_s22, %s505_s22, %s506_s23  }
  0x11   :  { %502 = dma.done.wait [#allocation3], 3072  }
  0x12   :  { %503 = vsyncadd [#allocation3], 4294964224  ;;  %v507_v0 = vmov 0.0   ;;  %vm508_vm0 = vmmov 0   ;;  %vm82_vm1 = vcmask 1041408   ;;  %vm78_vm2 = vcmask 31744  }
  0x13   :  { %404 = vmatprep.subr.bf16.mxu0 %v507_v0  ;;  %406 = vmatprep.mubr.msk.bf16.mxu0 %vm508_vm0, %v507_v0  ;;  %v31_v1 = vld [vmem:[#allocation2] sm:$0x3]  ;;  %v456_v4 = vld [vmem:[#allocation2 + $0x4] ss:$12 sps:$4 sm:$0xff]   ;;  %v457_v5 = vld [vmem:[#allocation2 + $0x1c] ss:$12 sps:$4 sm:$0xff]  }
  0x14   :  { %410 = vmatprep.subr.bf16.mxu1 %v507_v0  ;;  %426 = vmatprep.mubr.msk.bf16.mxu1 %vm508_vm0, %v507_v0  ;;  %v84_v2 = vsel %vm82_vm1, %v31_v1, 0  ;;  %v455_v3 = vld [vmem:[%s579_s0] sm:$0xff]   ;;  %v459_v7 = vld [vmem:[#allocation2 + $0x4c] ss:$12 sps:$4 sm:$0xff]   ;;  %v461_v9 = vld [vmem:[#allocation2 + $0x7c] ss:$12 sps:$4 sm:$0xff]  }
  0x15   :  { %405 = vmatpush3.bf16.msra.mxu0 %v84_v2  ;;  %411 = vmatpush3.bf16.msra.mxu1 %v456_v4  ;;  %v458_v6 = vld [vmem:[#allocation2 + $0x34] ss:$12 sps:$4 sm:$0xff]   ;;  %v460_v8 = vld [vmem:[#allocation2 + $0x64] ss:$12 sps:$4 sm:$0xff]   ;;  %v463_v11 = vld [vmem:[#allocation2 + $0xac] ss:$12 sps:$4 sm:$0xff]  }
  0x16   :  { %430 = vmatprep.subr.bf16.mxu0 %v507_v0  ;;  %412 = vmatprep.subr.bf16.mxu1 %v507_v0  ;;  %v462_v10 = vld [vmem:[#allocation2 + $0x94] ss:$12 sps:$4 sm:$0xff]   ;;  %v466_v14 = vld [vmem:[#allocation2 + $0x38] ss:$12 sps:$4 sm:$0xff]   ;;  %v467_v15 = vld [vmem:[#allocation2 + $0x50] ss:$12 sps:$4 sm:$0xff]  }
  0x17   :  { %v464_v12 = vld [vmem:[#allocation2 + $0x8] ss:$12 sps:$4 sm:$0xff]   ;;  %v465_v13 = vld [vmem:[#allocation2 + $0x20] ss:$12 sps:$4 sm:$0xff]   ;;  %v470_v28 = vld [vmem:[#allocation2 + $0x98] ss:$12 sps:$4 sm:$0xff]  }
  0x18   :  { %407 = vmatmul.mubr.msk.bf16.vlgmr.msra.gmra.mrb[0].mxu0 %vm78_vm2, %v455_v3  ;;  %v468_v16 = vld [vmem:[#allocation2 + $0x68] ss:$12 sps:$4 sm:$0xff]   ;;  %v469_v17 = vld [vmem:[#allocation2 + $0x80] ss:$12 sps:$4 sm:$0xff]   ;;  %v471_v29 = vld [vmem:[#allocation2 + $0xb0] ss:$12 sps:$4 sm:$0xff]  }
  0x19   :  { %446 = vmatprep.mubr.msk.bf16.mxu0 %vm508_vm0, %v507_v0  ;;  %413 = vmatpush3.bf16.msra.mxu1 %v457_v5  ;;  %v354_v18 = vld [vmem:[%s581_s2] ss:$0 sm:$0xff]  ;;  %v357_v30 = vld [vmem:[%s581_s2 + $0x1] ss:$0 sm:$0xff]  ;;  %v366_v38 = vld [vmem:[%s581_s2 + $0x2] ss:$0 sm:$0xff] }
  0x1a   :  { %414 = vmatprep.subr.bf16.mxu1 %v507_v0  ;;  %431 = vmatpush3.bf16.msra.mxu0 %v464_v12 }
  0x1b   :  { %432 = vmatprep.subr.bf16.mxu0 %v507_v0 }
  0x1d   :  { %415 = vmatpush3.bf16.msra.mxu1 %v458_v6 }
  0x1e   :  { %416 = vmatprep.subr.bf16.mxu1 %v507_v0  ;;  %433 = vmatpush3.bf16.msra.mxu0 %v465_v13 }
  0x1f   :  { %434 = vmatprep.subr.bf16.mxu0 %v507_v0 }
  0x21   :  { %417 = vmatpush3.bf16.msra.mxu1 %v459_v7 }
  0x22   :  { %418 = vmatprep.subr.bf16.mxu1 %v507_v0  ;;  %435 = vmatpush3.bf16.msra.mxu0 %v466_v14 }
  0x23   :  { %436 = vmatprep.subr.bf16.mxu0 %v507_v0 }
  0x25   :  { %419 = vmatpush3.bf16.msra.mxu1 %v460_v8 }
  0x26   :  { %420 = vmatprep.subr.bf16.mxu1 %v507_v0  ;;  %437 = vmatpush3.bf16.msra.mxu0 %v467_v15 }
  0x27   :  { %438 = vmatprep.subr.bf16.mxu0 %v507_v0 }
  0x29   :  { %421 = vmatpush3.bf16.msra.mxu1 %v461_v9 }
  0x2a   :  { %422 = vmatprep.subr.bf16.mxu1 %v507_v0  ;;  %439 = vmatpush3.bf16.msra.mxu0 %v468_v16 }
  0x2b   :  { %440 = vmatprep.subr.bf16.mxu0 %v507_v0 }
  0x2d   :  { %423 = vmatpush3.bf16.msra.mxu1 %v462_v10 }
  0x2e   :  { %424 = vmatprep.subr.bf16.mxu1 %v507_v0  ;;  %441 = vmatpush3.bf16.msra.mxu0 %v469_v17 }
  0x2f   :  { %442 = vmatprep.subr.bf16.mxu0 %v507_v0 }
  0x31   :  { %425 = vmatpush3.bf16.msra.mxu1 %v463_v11 }
  0x32   :  { %443 = vmatpush3.bf16.msra.mxu0 %v470_v28 }
  0x33   :  { %444 = vmatprep.subr.bf16.mxu0 %v507_v0 }
  0x36   :  { %445 = vmatpush3.bf16.msra.mxu0 %v471_v29 }
  0xeb   :  { %v120_v19 = vpop.f32.mrb[0].mxu0 }
  0xec   :  { %v121_v20 = vadd.f32 %v354_v18, %v120_v19  ;;  %v408_v21 = vpop.f32.mrb[1].mxu0 }
  0xed   :  { %v123_v22 = vpop.f32.mrb[2].mxu0 }
  0xee   :  { %v124_v23 = vadd.f32 %v354_v18, %v123_v22  ;;  %v409_v24 = vpop.f32.mrb[3].mxu0  ;;  %v127_v25 = vmax.f32 %v121_v20, 0.0 }
  0xf0   :  { %v128_v26 = vmax.f32 %v124_v23, 0.0 }
  0xf2   :  { %v129_v27 = vpack.c.bf16 %v128_v26, %v127_v25 }
  0xf4   :  { %427 = vmatmul.mubr.bf16.vlgmr.msra.gmra.mrb[0].mxu1 %v129_v27 }
 0x1c7   :  { %v218_v31 = vpop.f32.mrb[0].mxu1 }
 0x1c8   :  { %v428_v32 = vpop.f32.mrb[1].mxu1  ;;  %v219_v34 = vadd.f32 %v357_v30, %v218_v31 }
 0x1c9   :  { %v221_v33 = vpop.f32.mrb[2].mxu1 }
 0x1ca   :  { %v222_v35 = vadd.f32 %v357_v30, %v221_v33  ;;  %v429_v36 = vpop.f32.mrb[3].mxu1 }
 0x1cc   :  { %v225_v37 = vpack.c.bf16 %v222_v35, %v219_v34 }
 0x1ce   :  { %447 = vmatmul.mubr.bf16.vlgmr.msra.gmra.mrb[4].mxu0 %v225_v37 }
 0x2a1   :  { %v314_v39 = vpop.f32.mrb[4].mxu0 }
 0x2a2   :  { %v315_v40 = vadd.f32 %v366_v38, %v314_v39  ;;  %v448_v41 = vpop.f32.mrb[5].mxu0 }
 0x2a3   :  { %v317_v42 = vpop.f32.mrb[6].mxu0 }
 0x2a4   :  { %321 = vmax.xlane.f32.xlu0 %v315_v40  ;;  %v449_v43 = vpop.f32.mrb[7].mxu0  ;;  %v318_v44 = vadd.f32 %v366_v38, %v317_v42 }
 0x2a8   :  { %323 = vmax.xlane.f32.xlu0 %v318_v44 }
 0x331   :  { %v322_v45 = vpop.xlane.xlu0 %321 }
 0x332   :  { %v325_v46 = vsub.f32 %v315_v40, %v322_v45 }
 0x334   :  { %v327_v47 = vmul.f32 1.442695, %v325_v46 }
 0x335   :  { %v324_v48 = vpop.xlane.xlu0 %323 }
 0x336   :  { %472 = vpow2.f32 %v327_v47  ;;  %v326_v49 = vsub.f32 %v318_v44, %v324_v48 }
 0x338   :  { %v329_v50 = vmul.f32 1.442695, %v326_v49 }
 0x33a   :  { %474 = vpow2.f32 %v329_v50 }
 0x340   :  { %v473_v51 = vpop.eup %472 }
 0x341   :  { %331 = vadd.xlane.f32.xlu1 %v473_v51 }
 0x344   :  { %v475_v52 = vpop.eup %474 }
 0x345   :  { %333 = vadd.xlane.f32.xlu1 %v475_v52 }
 0x3ce   :  { %v332_v53 = vpop.xlane.xlu1 %331 }
 0x3cf   :  { %476 = vrcp.f32 %v332_v53 }
 0x3d2   :  { %v334_v54 = vpop.xlane.xlu1 %333 }
 0x3d3   :  { %478 = vrcp.f32 %v334_v54 }
 0x3d9   :  { %v477_v55 = vpop.eup %476 }
 0x3da   :  { %v337_v57 = vmul.f32 %v477_v55, %v473_v51 }
 0x3dd   :  { %v479_v56 = vpop.eup %478 }
 0x3de   :  { %v338_v58 = vmul.f32 %v479_v56, %v475_v52 }
 0x3e0   :  { %v382_v59 = vpack.c.bf16 %v338_v58, %v337_v57 }
 0x3e2   :  { %383 = vst [vmem:[%s582_s3] sm:$0xff] %v382_v59  }
 0x3e3   :  { %353 = vsyncpa [#allocation3], 1 }

</bundles_post_ra>
